<compile_context>
chip_gen: v7x
topology: tpu7x:2x2x1
jax: 0.10.0
libtpu: 0.0.40
codegen_flags: <defaults>
</compile_context>

<pallas_src>
import math

import jax
import jax.numpy as jnp
from jax import lax
from jax.experimental import pallas as pl
from jax.experimental.pallas import tpu as pltpu


# ----------------------------------------------------------------------------
# Pallas kernel: one fused-conv tile = a single lane-dense matmul on the MXU.
# ----------------------------------------------------------------------------
def sa_conv_kernel(w_ref, p_ref, o_ref):
    # w_ref : (Cout, Cin*K*K)    bf16  fused expert weights (constant over grid,
    #                                  not re-DMA'd: block index is always (0,0))
    # p_ref : (1, Cin*K*K, THW)  bf16  im2col slab for this (batch, hw-tile)
    # o_ref : (1, Cout, THW)     f32   lane-dense, NCHW-ordered output tile
    acc = jnp.dot(w_ref[...], p_ref[0], preferred_element_type=jnp.float32)
    o_ref[...] = acc[None].astype(o_ref.dtype)


def _pick_hw_tile(hw):
    # Largest lane-dense spatial tile: whole extent when small, otherwise a
    # multiple-of-128 divisor so blocks stay within a modest VMEM budget
    # (sized conservatively for v7x's smaller VMEM as well).
    if hw <= 4096:
        return hw
    for t in (4096, 2048, 1024, 512, 256, 128):
        if hw % t == 0:
            return t
    return hw


# ----------------------------------------------------------------------------
# Wrapper: routing MLP + expert fusion + im2col (glue) and the pallas_call.
# ----------------------------------------------------------------------------
def sa_conv_forward(x_nchw, params, scale, scale2, *, kernel_size=3, padding=1):
    # --- routing MLP (tiny, plain-JAX glue) ----------------------------------
    r_in = jnp.array([[1.0 / scale, 1.0 / scale2]], jnp.float32)            # (1, 2)
    h = jnp.maximum(r_in @ params["w1"].T + params["b1"], 0.0)              # (1, 64)
    routing = jax.nn.softmax(h @ params["w2"].T + params["b2"], axis=1)[0]  # (E,)

    # --- expert fusion, done ONCE (hoisted out of the kernel) ----------------
    wp = params["weight_pool"].astype(jnp.float32)          # (E, Cout, Cin, K, K)
    E, Cout, Cin, K, _ = wp.shape
    assert K == kernel_size
    fused = jnp.einsum("e,eoikl->oikl", routing, wp)        # (Cout, Cin, K, K)
    CKK = Cin * K * K
    fused_flat = fused.reshape(Cout, CKK).astype(jnp.bfloat16)

    # --- im2col in NCHW order (layout glue; the conv math runs in-kernel) ----
    N, _, H, W = x_nchw.shape
    p = padding
    xp = jnp.pad(x_nchw, ((0, 0), (0, 0), (p, p), (p, p)))  # (N, Cin, H+2p, W+2p)
    cols = [xp[:, :, kh:kh + H, kw:kw + W]
            for kh in range(K) for kw in range(K)]          # K*K x (N, Cin, H, W)
    patches = jnp.stack(cols, axis=2)                       # (N, Cin, K*K, H, W)
    patches = patches.reshape(N, CKK, H * W).astype(jnp.bfloat16)

    HW = H * W
    THW = _pick_hw_tile(HW)
    grid = (N, HW // THW)

    out = pl.pallas_call(
        sa_conv_kernel,
        out_shape=jax.ShapeDtypeStruct((N, Cout, HW), jnp.float32),
        grid_spec=pltpu.PrefetchScalarGridSpec(
            num_scalar_prefetch=0,
            grid=grid,
            in_specs=[
                pl.BlockSpec((Cout, CKK), lambda n, t: (0, 0)),
                pl.BlockSpec((1, CKK, THW), lambda n, t: (n, 0, t)),
            ],
            out_specs=pl.BlockSpec((1, Cout, THW), lambda n, t: (n, 0, t)),
        ),
        compiler_params=pltpu.CompilerParams(
            dimension_semantics=("parallel", "parallel"),
            vmem_limit_bytes=32 * 1024 * 1024),
    )(fused_flat, patches)

    # Output is already in NCHW channel order; this reshape is free (no transpose).
    out = out.reshape(N, Cout, H, W)

    # bias=False is the module default; support bias_pool if one is provided.
    if "bias_pool" in params:
        fused_bias = routing @ params["bias_pool"].astype(jnp.float32)      # (Cout,)
        out = out + fused_bias[None, :, None, None]
    return out


# ----------------------------------------------------------------------------
# Deterministic parameter construction (shapes from SA_conv.__init__).
# bias=False (the PyTorch default), so no bias_pool.
# ----------------------------------------------------------------------------
def make_params(key, channels_in, channels_out, kernel_size=3, num_experts=4):
    k1, k2, k3, k4, k5 = jax.random.split(key, 5)
    # routing: Linear(2, 64), Linear(64, num_experts)
    lim1 = 1.0 / math.sqrt(2.0)
    lim2 = 1.0 / math.sqrt(64.0)
    w1 = jax.random.uniform(k1, (64, 2), jnp.float32, -lim1, lim1)
    b1 = jax.random.uniform(k2, (64,), jnp.float32, -lim1, lim1)
    w2 = jax.random.uniform(k3, (num_experts, 64), jnp.float32, -lim2, lim2)
    b2 = jax.random.uniform(k4, (num_experts,), jnp.float32, -lim2, lim2)
    # weight pool: kaiming_uniform(a=sqrt(5)) -> uniform(-bound, bound),
    # bound = sqrt(6 / ((1 + a^2) * fan_in)) = 1/sqrt(fan_in)
    fan_in = channels_in * kernel_size * kernel_size
    bound = 1.0 / math.sqrt(fan_in)
    weight_pool = jax.random.uniform(
        k5, (num_experts, channels_out, channels_in, kernel_size, kernel_size),
        jnp.float32, -bound, bound)
    return {"w1": w1, "b1": b1, "w2": w2, "b2": b2, "weight_pool": weight_pool}


# ----------------------------------------------------------------------------
# Pure-JAX reference (for correctness check).
# ----------------------------------------------------------------------------
def sa_conv_reference(x_nchw, params, scale, scale2, *, padding=1):
    r_in = jnp.array([[1.0 / scale, 1.0 / scale2]], jnp.float32)
    h = jnp.maximum(r_in @ params["w1"].T + params["b1"], 0.0)
    routing = jax.nn.softmax(h @ params["w2"].T + params["b2"], axis=1)  # (1, E)
    wp = params["weight_pool"]                                            # (E,Co,Ci,K,K)
    fused = jnp.einsum("e,eoikl->oikl", routing[0], wp)                   # OIHW
    return lax.conv_general_dilated(
        x_nchw.astype(jnp.float32), fused,
        window_strides=(1, 1), padding=[(padding, padding), (padding, padding)],
        dimension_numbers=("NCHW", "OIHW", "NCHW"))


if __name__ == "__main__":
    key = jax.random.PRNGKey(0)
    kx, kp = jax.random.split(key)

    N, Cin, Cout, H, W = 2, 4, 4, 16, 16
    x = jax.random.normal(kx, (N, Cin, H, W), jnp.float32)   # NCHW like PyTorch
    params = make_params(kp, Cin, Cout, kernel_size=3, num_experts=4)

    scale, scale2 = 2.0, 3.0   # upscale factors fed to the routing network

    out = sa_conv_forward(x, params, scale, scale2)
    out = jax.block_until_ready(out)

    ref = jax.block_until_ready(sa_conv_reference(x, params, scale, scale2))
    assert out.shape == (N, Cout, H, W)
    # bf16 operands with f32 accumulation -> widened tolerance vs f32 reference.
    assert jnp.allclose(out, ref, atol=2e-2, rtol=2e-2), "mismatch vs reference"

    print("KERNEL_OK")
</pallas_src>

<mosaic_0001>
module attributes {stable_mosaic.version = 11 : i64} {
  func.func @sa_conv_kernel(%arg0: i32, %arg1: i32, %arg2: memref<4x36xbf16, #tpu.memory_space<vmem>>, %arg3: memref<1x36x256xbf16, #tpu.memory_space<vmem>>, %arg4: memref<1x4x256xf32, #tpu.memory_space<vmem>>) attributes {dimension_semantics = [#tpu.dimension_semantics<parallel>, #tpu.dimension_semantics<parallel>], iteration_bounds = array<i64: 2, 1>, scalar_prefetch = 0 : i64, scratch_operands = 0 : i64, tpu.core_type = #tpu.core_type<tc>, window_params = [{pipeline_mode = #tpu.pipeline_mode<synchronous>, transform_indices = @transform_0, window_bounds = array<i64: 4, 36>}, {transform_indices = @transform_1, window_bounds = array<i64: 1, 36, 256>}, {transform_indices = @transform_2, window_bounds = array<i64: 1, 4, 256>}]} {
    %c0 = arith.constant 0 : index
    %c0_0 = arith.constant 0 : index
    %0 = vector.load %arg2[%c0, %c0_0] : memref<4x36xbf16, #tpu.memory_space<vmem>>, vector<4x36xbf16>
    %c0_1 = arith.constant 0 : index
    %c0_2 = arith.constant 0 : index
    %c0_3 = arith.constant 0 : index
    %1 = vector.load %arg3[%c0_1, %c0_2, %c0_3] : memref<1x36x256xbf16, #tpu.memory_space<vmem>>, vector<1x36x256xbf16>
    %2 = vector.shape_cast %1 : vector<1x36x256xbf16> to vector<36x256xbf16>
    %cst = arith.constant dense<0.000000e+00> : vector<4x256xf32>
    %3 = tpu.matmul %0, %2, %cst {dimension_numbers = #tpu.dot_dimension_numbers<[1], [0], [0], [1], [0, 0, 1, 1], [], []>} : vector<4x36xbf16>, vector<36x256xbf16>, vector<4x256xf32> -> vector<4x256xf32>
    %4 = vector.shape_cast %3 : vector<4x256xf32> to vector<1x4x256xf32>
    %c0_4 = arith.constant 0 : index
    %c0_5 = arith.constant 0 : index
    %c0_6 = arith.constant 0 : index
    %5 = vector.load %arg4[%c0_4, %c0_5, %c0_6] : memref<1x4x256xf32, #tpu.memory_space<vmem>>, vector<1x4x256xf32>
    tpu.vector_store %arg4[%c0_4, %c0_5, %c0_6], %4 {strides = array<i32>} : memref<1x4x256xf32, #tpu.memory_space<vmem>>, vector<1x4x256xf32>,
    return
  }
  func.func @transform_0(%arg0: i32, %arg1: i32) -> (i32, i32) {
    %c0_i32 = arith.constant 0 : i32
    %c0_i32_0 = arith.constant 0 : i32
    %c0_i32_1 = arith.constant 0 : i32
    return %c0_i32, %c0_i32_0 : i32, i32
  }
  func.func @transform_1(%arg0: i32, %arg1: i32) -> (i32, i32, i32) {
    %c0_i32 = arith.constant 0 : i32
    %c0_i32_0 = arith.constant 0 : i32
    return %arg0, %c0_i32, %arg1 : i32, i32, i32
  }
  func.func @transform_2(%arg0: i32, %arg1: i32) -> (i32, i32, i32) {
    %c0_i32 = arith.constant 0 : i32
    %c0_i32_0 = arith.constant 0 : i32
    return %arg0, %c0_i32, %arg1 : i32, i32, i32
  }
}

</mosaic_0001>

<bundles_post_ra>
// kernel: tpu_custom_call.1
= control target key start
LH: loop header
LB: loop body
LE: loop exit
PB: predicated region body
PF: predicated region fallthrough
CT: control target
= control target key end

     0   :  { %7 = vsyncpa [#allocation3], 0  ;;  %s653_s0 = inlined_call_operand.vmem [shape: bf16[4,36], index: 0, kind: input, shape index: {}]   ;;  %s654_s1 = inlined_call_operand.vmem [shape: bf16[2,36,256], index: 1, kind: input, shape index: {}]   ;;  %s655_s2 = inlined_call_operand.hbm [shape: f32[2,4,256], index: 2, kind: output, shape index: {}]  }
   0x1   :  { %9 = vsyncpa [#allocation3 + $0x1], 0  ;;  %s538_s9 = smov 0   ;;  %s540_s10 = smov 0  }
   0x2   :  { %s542_s11 = smov 0   ;;  %s544_s12 = smov 0  }
   0x3   :  { %s546_s13 = smov 0   ;;  %s548_s14 = smov 0  }
   0x4 LB: > { %s355_s15 = sadd.s32 4294967295, %s519_s14   ;;  %s356_s16 = sadd.s32 4294967294, %s519_s14   ;;  %s519_s14 = sphi %s548_s14, %s15_s14   ;;  %s515_s13 = sphi %s546_s13, %s662_s13   ;;  %s511_s12 = sphi %s544_s12, %s661_s12   ;;  %s507_s11 = sphi %s542_s11, %s660_s11   ;;  %s503_s10 = sphi %s540_s10, %s659_s10   ;;  %s499_s9 = sphi %s538_s9, %s658_s9  }
   0x5   : > { %s27_s17 = sadd.s32 1, %s515_s13  ;;  %s85_s18 = sadd.s32 1, %s507_s11 }
   0x6   : > { %p29_p0 = scmp.ge.s32.totalorder %s27_s17, 2  ;;  %p95_p1 = scmp.ne.s32.totalorder %s507_s11, %s503_s10 }
   0x7   : > { %p96_p2 = scmp.eq.s32.totalorder %s355_s15, 1  ;;  %p101_p3 = scmp.ne.s32.totalorder %s503_s10, %s499_s9 }
   0x8   : > { %s664_s17 = smov (%p29_p0, %s27_s17), 0  ;;  %p102_p5 = scmp.eq.s32.totalorder %s356_s16, 1 }
   0x9   : > { %p578_p4 = por %p96_p2, %p95_p1  ;;  %s80_s20 = ssub.s32 %s515_s13, %s664_s17 }
   0xa   : > { %p359_p6 = scmp.ge.s32.totalorder %s519_s14, 1  ;;  %p83_p7 = scmp.eq.s32.totalorder %s80_s20, 0 }
   0xb   : > { %p585_p8 = por %p102_p5, %p101_p3  ;;  %p136_p9 = scmp.lt.s32.totalorder %s519_s14, 3 }
   0xc   : > { %s591_s22 = scalar_select %p83_p7, %s507_s11, %s85_s18  }
   0xd   : > { %p137_p10 = pnand %p359_p6, %p136_p9 }
   0xe   : > { %p163_p11 = scmp.lt.s32.totalorder (!%p137_p10), %s511_s12, 1  ;;  %v521_v0 = vmov (!%p137_p10), 0   ;;  %vm209_vm0 = vcmask (!%p137_p10), 1041408   ;;  %v174_v9 = vld [vmem:[%s653_s0] sm:$0x3] (!%p137_p10)  ;;  %vm205_vm1 = vcmask (!%p137_p10), 293888  }
   0xf   : > { %140 = sbr.rel (%p137_p10) target bundleno = 269 (0x10d), region = 28  ;;  %248 = vmatprep.mubr.bf16.mxu0 (!%p137_p10), %v521_v0  ;;  %s159_s30 = sand.u32 (!%p137_p10), 1, %s503_s10  }
  0x10   : > { %s360_s3 = sshll.u32 (!%p137_p10), %s159_s30, 3  ;;  %s375_s4 = sshll.u32 (!%p137_p10), %s511_s12, 7 }
  0x11   : > { %s161_s5 = scalar_lea.vmem (!%p137_p10), [#allocation2], %s360_s3  ;;  %s606_s15 = scalar_lea.hbm (!%p137_p10), %s655_s2, %s375_s4 }
  0x12   : > { %s279_s6 = sshll.u32 (!%p137_p10), %s161_s5, 4  ;;  %s263_s16 = scalar_lea.sflag (!%p137_p10), [#allocation3], %s159_s30  ;;  %s608_s6 = int_to_ptr.vmem [resolvable:$true] %s279_s6 }
  0x13   : > { %s522_s18 = smov (!%p137_p10), [#allocation2]  }
  0x14   : > { %s445_s20 = sshll.u32 (!%p137_p10), %s522_s18, 4  ;;  %s446_s20 = int_to_ptr.vmem [resolvable:$false] %s445_s20 }
  0x15   : > { %p448_p1 = scmp.lt.s32.totalorder (!%p137_p10), %s608_s6, %s446_s20 }
  0x16   : > { %s164_s23 = scalar_select %p163_p11, %s511_s12, 1 }
  0x17   : > { %s441_s12 = scalar_lea.vmem %s608_s6, 128 }
  0x18   : > { %s376_s24 = smul.u32 40, %s164_s23  ;;  %p442_p12 = scmp.ne.s32.totalorder %s608_s6, %s441_s12 }
  0x19   : > { %s447_s23 = scalar_lea.vmem %s446_s20, 256 }
  0x1a   : > { %s170_s27 = scalar_lea.vmem %s654_s1, %s376_s24  ;;  %p443_p13 = pnand %p442_p12, %p578_p4 }
  0x1b   : > { %v433_v1 = vld [vmem:[%s170_s27 + $0x4] ss:$8 sps:$4 sm:$0xff]   ;;  %v435_v2 = vld [vmem:[%s170_s27] ss:$8 sps:$4 sm:$0xff]   ;;  %v436_v3 = vld [vmem:[%s170_s27 + $0x14] ss:$8 sps:$4 sm:$0xff]   ;;  %p449_p2 = scmp.lt.s32.totalorder %s447_s23, %s441_s12 }
  0x1c   : > { %216 = vmatprep.subr.bf16.mxu0 %v433_v1  ;;  %v179_v4 = vld [vmem:[%s170_s27 + $0x20] sm:$0x33]  ;;  %v438_v5 = vld [vmem:[%s170_s27 + $0x10] ss:$8 sps:$4 sm:$0xff]   ;;  %p444_p0 = pneg %p443_p13 }
  0x1d   : > { %217 = vmatpush1.bf16.msra.mxu0 %v435_v2  ;;  %v367_v6 = vcombine.high %v179_v4, %v179_v4  ;;  %v366_v7 = vcombine.low %v179_v4, %v179_v4  ;;  %p450_p3 = por %p449_p2, %p448_p1 }
  0x1e   : > { %218 = vmatprep.subr.bf16.mxu0 %v436_v3 }
  0x1f   : > { %v211_v8 = vsel %vm209_vm0, %v366_v7, 0  ;;  %p451_p5 = pnand %p450_p3, %p444_p0 }
  0x21   : > { %219 = vmatpush1.bf16.msra.mxu0 %v438_v5 }
  0x22   : > { %368 = vmatprep.subr.msk.bf16.mxu0 %vm209_vm0, %v367_v6 }
  0x25   : > { %221 = vmatpush1.bf16.msra.mxu0 %v211_v8 }
  0x28   : > { %369 = vmatmul.mubr.msk.bf16.vlgmr.msra.gmra.mrb[0].mxu0 %vm205_vm1, %v174_v9 }
  0xfb   : > { %v250_v10 = vpop.f32.mrb[0].mxu0 }
  0xfc   : > { %v252_v11 = vpop.f32.mrb[1].mxu0 }
  0xfd   : > { %v259_v12 = vcombine.low %v250_v10, %v252_v11  ;;  %v254_v13 = vpop.f32.mrb[2].mxu0 }
  0xfe   : > { %v255_v14 = vpop.f32.mrb[3].mxu0 }
  0xff   : > { %261 = vst [vmem:[%s161_s5] sm:$0xff] %v259_v12 }
 0x100   : > { %454 = shalt.err (!%p451_p5)
}
 0x101   : > { %s455_s24 = scalar_lea.hbm %s606_s15, 128  ;;  %s459_s27 = scalar_lea.hbm %s655_s2, 256 }
 0x102   : > { %p456_p6 = scmp.ne.s32.totalorder %s606_s15, %s455_s24  ;;  %p460_p10 = scmp.lt.u32.totalorder %s606_s15, %s655_s2 }
 0x103   : > { %p461_p11 = scmp.lt.u32.totalorder %s459_s27, %s455_s24  ;;  %p463_p13 = scmp.lt.u32.totalorder %s455_s24, %s606_s15 }
 0x104   : > { %p457_p7 = pnand %p456_p6, %p578_p4 }
 0x105   : > { %p462_p12 = por %p461_p11, %p460_p10 }
 0x106   : > { %p458_p9 = pneg %p457_p7 }
 0x107   : > { %p464_p0 = por %p463_p13, %p462_p12 }
 0x109   : > { %p465_p1 = pnand %p464_p0, %p458_p9 }
 0x10b   : > { %468 = shalt.err (!%p465_p1)
}
 0x10c   : > { %377 = dma.vmem_to_hbm [thread:$0]  (%p578_p4), %s608_s6, 128, %s606_s15, %s263_s16  }
 0x10d PF: > { %p383_p2 = scmp.ge.s32.totalorder %s519_s14, 2  ;;  %s291_s30 = sand.u32 1, %s499_s9  }
 0x10e   : > { %s292_s3 = scalar_lea.sflag [#allocation3], %s291_s30 }
 0x10f   : > { %p380_p3 = pnand %p383_p2, %p585_p8 }
 0x111   : > { %494 = dma.done.wait (!%p380_p3), %s292_s3, 128  }
 0x112   : > { %496 = vsyncadd (!%p380_p3), %s292_s3, 4294967168  ;;  %s15_s14 = sadd.s32 1, %s519_s14   ;;  %s658_s9 = smov %s503_s10 }
 0x113   : > { %p12_p5 = scmp.ge.s32.totalorder %s15_s14, 4   ;;  %s659_s10 = smov %s507_s11 }
 0x114   : > { %s660_s11 = smov %s591_s22  ;;  %s661_s12 = smov %s515_s13 }
 0x115   : > { %s662_s13 = smov %s664_s17  ;;  %14 = sbr.rel (!%p12_p5) target bundleno = 4 (0x4), region = 63 }
 0x11c   :  { %297 = vsyncpa [#allocation3], 1 }
 0x11d   :  { %299 = vsyncpa [#allocation3 + $0x1], 1 }

</bundles_post_ra>
